<compile_context>
chip_gen: v5e
topology: v5e:2x2
jax: 0.10.0
libtpu: 0.0.40
codegen_flags: <defaults>
</compile_context>

<pallas_src>
import jax
import jax.numpy as jnp
import numpy as np
from jax.experimental import pallas as pl
from jax.experimental.pallas import tpu as pltpu

_LANE = 128
_MAX_TILE_HW = 2048          # lane sweet spot; big per-step blocks come from block_b


def _cdiv(a, b):
    return -(-a // b)


# ----------------------------------------------------------------------------- kernel
def _add_pos_kernel(pos_ref, x_ref, o_ref):
    # pos_ref: (Cg, tile_hw) float32, batch-invariant positional-table tile.
    # x_ref / o_ref: (block_b, Cg, tile_hw) in the input dtype.
    pos = pos_ref[...][None, :, :]
    o_ref[...] = (x_ref[...].astype(jnp.float32) + pos).astype(o_ref.dtype)


# ------------------------------------------------------------------ positional table
def _pos_table(C, hw, temperature):
    """Batch-invariant positional table, (C, hw) float32. Mirrors the PyTorch math."""
    c_embed = jnp.arange(1, C + 1, dtype=jnp.float32)[:, None]       # cumsum of ones
    j = jnp.arange(hw, dtype=jnp.float32)
    dim_t = temperature ** (2.0 * jnp.floor(j / 2.0) / hw)           # (hw,)
    angle = c_embed * dim_t                                          # (C, hw)
    even = (jnp.arange(hw) % 2) == 0
    # pos[j] = sin(angle[j]) if j even else cos(angle[j])  (== stack+flatten interleave)
    return jnp.where(even, jnp.sin(angle), jnp.cos(angle))


# --------------------------------------------------------------------- tiling helpers
def _fold_batch(B, C, itemsize):
    """Fold g consecutive batches into the channel (sublane) axis when C is small,
    so blocks fill whole vreg sublane tiles instead of padding them."""
    sub = 8 * max(1, 4 // itemsize)          # f32: 8, bf16: 16, int8: 32
    if B == 1 or C % sub == 0:
        return 1
    divisors = [d for d in range(1, B + 1) if B % d == 0 and d * C <= 8 * sub]
    exact = [d for d in divisors if (d * C) % sub == 0]
    if exact:
        return min(exact)                    # smallest g that fills sublane tiles exactly
    full = [d for d in divisors if d * C >= sub]
    return min(full) if full else max(divisors)


def _vmem_budget():
    """(per-step block budget, physical VMEM) in bytes, generation aware."""
    try:
        phys = int(pltpu.get_tpu_info().vmem_capacity_bytes)
    except Exception:                        # no query available -> assume v7x per-TC
        phys = 64 * 1024 * 1024
    phys = max(phys, 32 * 1024 * 1024)
    # v7x (64 MiB): 16 MiB of blocks; v5e/v6e (128 MiB): 24 MiB of blocks.
    budget = min(max(phys // 4, 8 * 1024 * 1024), 24 * 1024 * 1024)
    return budget, phys


def _choose_blocks(Bg, Cg, hw, itemsize, budget):
    """Pick (block_b, tile_hw) given the reshaped (Bg, Cg, hw) problem."""
    def pos_blk(t):                          # pos block is float32 regardless of x dtype
        return Cg * t * 4

    def x_blk(bb, t):
        return bb * Cg * t * itemsize

    def step_bytes(bb, t):                   # in + out blocks + pos, all double-buffered
        return 2 * (2 * x_blk(bb, t) + pos_blk(t))

    # Lane tile: full dim when small (always legal), else a 128-multiple with the
    # boundary block clamped by Pallas (grid uses cdiv) -- no divisibility cliff.
    tile_hw = hw if hw <= _MAX_TILE_HW else _MAX_TILE_HW
    if step_bytes(1, tile_hw) > budget and hw > _LANE:
        per_lane = 2 * (2 * itemsize + 4) * Cg
        tile_hw = max(_LANE, (budget // max(1, per_lane)) // _LANE * _LANE)
    n_hw = _cdiv(hw, tile_hw)

    # Batch block: grow until ~budget/4 bytes of x per grid step, within the budget.
    target = max(1, budget // 4)
    fit = (budget - 2 * pos_blk(tile_hw)) // max(1, 4 * x_blk(1, tile_hw))
    block_b = int(max(1, min(Bg, fit, max(1, target // max(1, x_blk(1, tile_hw))))))

    # Keep >=2-4 grid steps when there is enough work: overlaps in-DMA/compute/out-DMA
    # and gives both v7x TensorCores something to shard.
    total = Bg * Cg * hw * itemsize
    min_steps = 4 if total > (512 << 10) else (2 if total > (128 << 10) else 1)
    while block_b > 1 and n_hw * _cdiv(Bg, block_b) < min_steps:
        block_b = max(1, block_b // 2)
    return block_b, tile_hw


# --------------------------------------------------------------------------- wrapper
def position_encoding_sine(x, temperature: float = 10000.0):
    """x: (B, C, H, W). Returns pos + x with the same shape/dtype."""
    B, C, H, W = x.shape
    hw = H * W
    itemsize = jnp.dtype(x.dtype).itemsize

    # Batch-invariant table, hoisted out of the kernel (computed once by XLA).
    pos = _pos_table(C, hw, temperature)                       # (C, hw) f32

    # Small-C sublane packing (metadata-only reshape, no HBM copy).
    g = _fold_batch(B, C, itemsize)
    Bg, Cg = B // g, g * C
    x3 = x.reshape(Bg, Cg, hw)
    pos_g = jnp.tile(pos, (g, 1)) if g > 1 else pos            # (Cg, hw) f32

    budget, phys_vmem = _vmem_budget()
    block_b, tile_hw = _choose_blocks(Bg, Cg, hw, itemsize, budget)
    grid = (_cdiv(hw, tile_hw), _cdiv(Bg, block_b))            # batch innermost ->
                                                               # pos tile stays resident
    need = 2 * (2 * block_b * Cg * tile_hw * itemsize + Cg * tile_hw * 4)
    vmem_limit = int(min(phys_vmem * 3 // 4, max(2 * need, 32 * 1024 * 1024)))

    out = pl.pallas_call(
        _add_pos_kernel,
        out_shape=jax.ShapeDtypeStruct((Bg, Cg, hw), x.dtype),
        grid=grid,
        in_specs=[
            pl.BlockSpec((Cg, tile_hw), lambda t, b: (0, t)),              # pos (resident)
            pl.BlockSpec((block_b, Cg, tile_hw), lambda t, b: (b, 0, t)),  # x
        ],
        out_specs=pl.BlockSpec((block_b, Cg, tile_hw), lambda t, b: (b, 0, t)),
        compiler_params=pltpu.CompilerParams(
            dimension_semantics=("parallel", "parallel"),
            vmem_limit_bytes=vmem_limit,
        ),
    )(pos_g, x3)
    return out.reshape(B, C, H, W)


# ------------------------------------------------------------------------- reference
def _reference(x, temperature: float = 10000.0):
    """Pure-JAX mirror of the PyTorch forward."""
    B, C, H, W = x.shape
    hw = H * W
    mask = jnp.ones(x.shape[:-2], jnp.float32)
    c_embed = jnp.cumsum(mask, axis=-1)                                  # (B, C)
    j = jnp.arange(hw, dtype=jnp.float32)
    dim_t = temperature ** (2.0 * jnp.floor(j / 2.0) / hw)               # (hw,)
    pos_c = c_embed[..., None] * dim_t                                   # (B, C, hw)
    pos = jnp.stack(
        (jnp.sin(pos_c[..., 0::2]), jnp.cos(pos_c[..., 1::2])), axis=-1
    ).reshape(B, C, hw)
    return pos.reshape(x.shape) + x


if __name__ == "__main__":
    key = jax.random.PRNGKey(0)

    # Primary shape from the module's intended use.
    B, C, H, W = 2, 4, 16, 16
    x = jax.random.normal(key, (B, C, H, W), dtype=jnp.float32)
    out = jax.block_until_ready(position_encoding_sine(x))
    np.testing.assert_allclose(np.asarray(out), np.asarray(_reference(x)),
                               rtol=1e-5, atol=1e-5)

    # A non-128-multiple spatial size exercises the no-pad / sublane-fold paths.
    x2 = jax.random.normal(jax.random.PRNGKey(1), (2, 6, 10, 30), dtype=jnp.float32)
    out2 = jax.block_until_ready(position_encoding_sine(x2))
    np.testing.assert_allclose(np.asarray(out2), np.asarray(_reference(x2)),
                               rtol=1e-5, atol=1e-5)

    print("KERNEL_OK")
</pallas_src>

<mosaic_0001>
module attributes {stable_mosaic.version = 11 : i64} {
  func.func @_add_pos_kernel(%arg0: i32, %arg1: i32, %arg2: memref<8x256xf32, #tpu.memory_space<vmem>>, %arg3: memref<1x8x256xf32, #tpu.memory_space<vmem>>, %arg4: memref<1x8x256xf32, #tpu.memory_space<vmem>>) attributes {dimension_semantics = [#tpu.dimension_semantics<parallel>, #tpu.dimension_semantics<parallel>], iteration_bounds = array<i64: 1, 1>, scalar_prefetch = 0 : i64, scratch_operands = 0 : i64, tpu.core_type = #tpu.core_type<tc>, window_params = [{transform_indices = @transform_0, window_bounds = array<i64: 8, 256>}, {transform_indices = @transform_1, window_bounds = array<i64: 1, 8, 256>}, {transform_indices = @transform_2, window_bounds = array<i64: 1, 8, 256>}]} {
    %c0 = arith.constant 0 : index
    %c0_0 = arith.constant 0 : index
    %0 = vector.load %arg2[%c0, %c0_0] : memref<8x256xf32, #tpu.memory_space<vmem>>, vector<8x256xf32>
    %1 = vector.shape_cast %0 : vector<8x256xf32> to vector<1x8x256xf32>
    %c0_1 = arith.constant 0 : index
    %c0_2 = arith.constant 0 : index
    %c0_3 = arith.constant 0 : index
    %2 = vector.load %arg3[%c0_1, %c0_2, %c0_3] : memref<1x8x256xf32, #tpu.memory_space<vmem>>, vector<1x8x256xf32>
    %3 = arith.addf %2, %1 : vector<1x8x256xf32>
    %c0_4 = arith.constant 0 : index
    %c0_5 = arith.constant 0 : index
    %c0_6 = arith.constant 0 : index
    %4 = vector.load %arg4[%c0_4, %c0_5, %c0_6] : memref<1x8x256xf32, #tpu.memory_space<vmem>>, vector<1x8x256xf32>
    tpu.vector_store %arg4[%c0_4, %c0_5, %c0_6], %3 {strides = array<i32>} : memref<1x8x256xf32, #tpu.memory_space<vmem>>, vector<1x8x256xf32>,
    return
  }
  func.func @transform_0(%arg0: i32, %arg1: i32) -> (i32, i32) {
    %c0_i32 = arith.constant 0 : i32
    %c0_i32_0 = arith.constant 0 : i32
    return %c0_i32, %arg0 : i32, i32
  }
  func.func @transform_1(%arg0: i32, %arg1: i32) -> (i32, i32, i32) {
    %c0_i32 = arith.constant 0 : i32
    %c0_i32_0 = arith.constant 0 : i32
    return %arg1, %c0_i32, %arg0 : i32, i32, i32
  }
  func.func @transform_2(%arg0: i32, %arg1: i32) -> (i32, i32, i32) {
    %c0_i32 = arith.constant 0 : i32
    %c0_i32_0 = arith.constant 0 : i32
    return %arg1, %c0_i32, %arg0 : i32, i32, i32
  }
}

</mosaic_0001>

<bundles_post_ra>
// kernel: tpu_custom_call.1
= control target key start
LH: loop header
LB: loop body
LE: loop exit
PB: predicated region body
PF: predicated region fallthrough
CT: control target
= control target key end

     0   :  { %7 = vsyncpa [#allocation3], 0  ;;  %s174_s0 = inlined_call_operand.hbm [shape: f32[8,256], index: 0, kind: input, shape index: {}]   ;;  %s175_s1 = inlined_call_operand.hbm [shape: f32[1,8,256], index: 1, kind: input, shape index: {}]   ;;  %s176_s2 = inlined_call_operand.hbm [shape: f32[1,8,256], index: 2, kind: output, shape index: {}]  }
   0x1   :  { %8 = vsyncpa [#allocation6], 0 }
   0x2   :  { %9 = vsyncpa [#allocation4], 0  ;;  %s15_s11 = sshll.u32 %s174_s0, 4  ;;  %s147_s12 = smov [#allocation2]   ;;  %s16_s11 = int_to_ptr.hbm [resolvable:$true] %s15_s11 }
   0x3   :  { %s17_s13 = sshll.u32 %s147_s12, 4  ;;  %s26_s16 = sshll.u32 %s175_s1, 4  ;;  %s18_s13 = int_to_ptr.vmem [resolvable:$true] %s17_s13  ;;  %s27_s16 = int_to_ptr.hbm [resolvable:$true] %s26_s16 }
   0x4   :  { %20 = dma.hbm_to_vmem [thread:$0]  %s16_s11, 256, %s18_s13, [#allocation3]  }
   0x5   :  { %s148_s17 = smov [#allocation5]  }
   0x6   :  { %s28_s18 = sshll.u32 %s148_s17, 4  ;;  %s29_s18 = int_to_ptr.vmem [resolvable:$true] %s28_s18 }
   0x7   :  { %31 = dma.hbm_to_vmem [thread:$0]  %s27_s16, 256, %s29_s18, [#allocation6]  }
   0x8   :  { %141 = dma.done.wait [#allocation3], 256  }
   0x9   :  { %142 = vsyncadd [#allocation3], 4294967040 }
   0xa   :  { %143 = dma.done.wait [#allocation6], 256  }
   0xb   :  { %144 = vsyncadd [#allocation6], 4294967040  ;;  %s149_s19 = smov [#allocation7]   ;;  %s55_s22 = sshll.u32 %s176_s2, 4  ;;  %v40_v0 = vld [vmem:[#allocation2] sm:$0xff]  ;;  %v42_v1 = vld [vmem:[#allocation5] sm:$0xff]  ;;  %s56_s22 = int_to_ptr.hbm [resolvable:$true] %s55_s22 }
   0xc   :  { %s53_s0 = sshll.u32 %s149_s19, 4  ;;  %v41_v2 = vld [vmem:[#allocation2 + $0x8] sm:$0xff]  ;;  %v44_v3 = vadd.f32 %v42_v1, %v40_v0  ;;  %v43_v4 = vld [vmem:[#allocation5 + $0x8] sm:$0xff]  ;;  %s54_s0 = int_to_ptr.vmem [resolvable:$true] %s53_s0 }
   0xd   :  { %v45_v5 = vadd.f32 %v43_v4, %v41_v2 }
   0xe   :  { %46 = vst [vmem:[#allocation7] sm:$0xff] %v44_v3 }
   0xf   :  { %47 = vst [vmem:[#allocation7 + $0x8] sm:$0xff] %v45_v5 }
  0x10   :  { %58 = dma.vmem_to_hbm [thread:$0]  %s54_s0, 256, %s56_s22, [#allocation4]  }
  0x11   :  { %145 = dma.done.wait [#allocation4], 256  }
  0x12   :  { %146 = vsyncadd [#allocation4], 4294967040 }
  0x13   :  { %63 = vsyncpa [#allocation3], 1 }
  0x14   :  { %64 = vsyncpa [#allocation6], 1 }
  0x15   :  { %65 = vsyncpa [#allocation4], 1 }

</bundles_post_ra>
